<compile_context>
chip_gen: v6e
topology: v6e:2x2x1
jax: 0.10.0
libtpu: 0.0.40
codegen_flags: <defaults>
</compile_context>

<pallas_src>
import functools

import jax
import jax.numpy as jnp
from jax import lax
from jax.experimental import pallas as pl
from jax.experimental.pallas import tpu as pltpu


def _round_up(x, m):
    return ((x + m - 1) // m) * m


def _choose_tiling(n, block_req):
    """Pad rows to a multiple of 128 and split them evenly over grid steps."""
    n_pad = _round_up(max(n, 1), 128)
    req = max(128, min((block_req // 128) * 128, n_pad))
    steps = -(-n_pad // req)                       # cdiv
    block = _round_up(-(-n_pad // steps), 128)     # even split, 128-aligned
    return block, steps, steps * block             # total rows the kernel sees


def _pick_chunk(block):
    """Largest lane-chunk <= 1024 (multiple of 128) that divides the block."""
    k = block // 128
    d = max(d for d in range(1, 9) if k % d == 0)
    return 128 * d


def _silu(x):
    # SiLU(x) = x * sigmoid(x); sigmoid via tanh is overflow-free and stays on
    # the EUP slot (no exp/reciprocal pair needed).
    return x * (0.5 * jnp.tanh(0.5 * x) + 0.5)


def antecedent_kernel(z_ref, w1_ref, b1_ref, w2_ref, b2_ref, w3_ref, b3_ref,
                      o_ref, *, chunk, unroll):
    # z_ref: (block, in_dim) f32; o_ref: (1, block) f32 (batch on lanes).
    block = z_ref.shape[0]
    n_chunks = block // chunk

    w1 = w1_ref[...]   # (64, in_dim)
    b1 = b1_ref[...]   # (64, 1)
    w2 = w2_ref[...]   # (16, 64)
    b2 = b2_ref[...]   # (16, 1)
    w3 = w3_ref[...]   # (16, 1)
    b3 = b3_ref[...]   # (1, 1)

    def process(start):
        start = pl.multiple_of(start, 128)
        z_c = z_ref[pl.ds(start, chunk), :]                    # (chunk, in_dim)
        # Layer 1: contract in_dim of both operands -> (64, chunk) batch-on-lanes.
        h1 = lax.dot_general(w1, z_c, (((1,), (1,)), ((), ())),
                             preferred_element_type=jnp.float32) + b1
        h1 = _silu(h1)                                         # (64, chunk)
        # Layer 2: (16, 64) @ (64, chunk).
        h2 = _silu(jnp.dot(w2, h1, preferred_element_type=jnp.float32) + b2)
        # Layer 3: single output column -> VPU multiply + sublane reduce (XLU),
        # result already lane-dense (1, chunk).
        out = jnp.sum(h2 * w3, axis=0, keepdims=True) + b3
        o_ref[:, pl.ds(start, chunk)] = out.astype(o_ref.dtype)

    if n_chunks == 1:
        process(0)
    else:
        def body(c, carry):
            process(c * chunk)
            return carry
        lax.fori_loop(0, n_chunks, body, 0, unroll=unroll)


@functools.partial(jax.jit, static_argnames=("block_n",))
def antecedent_net(z, params, block_n=8192):
    """z: (N, in_dim) float32.  params: dict w1,b1,w2,b2,w3,b3.  Returns (N, 1) f32."""
    z = z.astype(jnp.float32)
    n, in_dim = z.shape

    block, steps, total = _choose_tiling(n, block_n)
    if total > n:
        z = jnp.pad(z, ((0, total - n), (0, 0)))

    h1d = params["w1"].shape[1]   # 64
    h2d = params["w2"].shape[1]   # 16

    # Tiny weights/biases, transposed to (out, in) for the batch-on-lanes
    # orientation; biases as column vectors so they broadcast over lanes.
    w1t = params["w1"].T.astype(jnp.float32)          # (64, in_dim)
    w2t = params["w2"].T.astype(jnp.float32)          # (16, 64)
    w3c = params["w3"].astype(jnp.float32)            # (16, 1)
    b1c = params["b1"].reshape(h1d, 1).astype(jnp.float32)
    b2c = params["b2"].reshape(h2d, 1).astype(jnp.float32)
    b3c = params["b3"].reshape(1, 1).astype(jnp.float32)

    chunk = _pick_chunk(block)
    unroll = (block // chunk) <= 32

    full = lambda a: pl.BlockSpec(a.shape, lambda i: (0, 0))  # grid-invariant block

    kernel = functools.partial(antecedent_kernel, chunk=chunk, unroll=unroll)

    out_row = pl.pallas_call(
        kernel,
        out_shape=jax.ShapeDtypeStruct((1, total), jnp.float32),
        grid_spec=pltpu.PrefetchScalarGridSpec(
            num_scalar_prefetch=0,
            grid=(steps,),
            in_specs=[
                pl.BlockSpec((block, in_dim), lambda i: (i, 0)),   # streamed z tile
                full(w1t), full(b1c),                              # layer 1
                full(w2t), full(b2c),                              # layer 2
                full(w3c), full(b3c),                              # layer 3
            ],
            out_specs=pl.BlockSpec((1, block), lambda i: (0, i)),  # lane-dense row
        ),
        compiler_params=pltpu.CompilerParams(
            dimension_semantics=("parallel",),
            vmem_limit_bytes=64 * 1024 * 1024,
        ),
    )(z, w1t, b1c, w2t, b2c, w3c, b3c)

    # Back to the module's (N, 1) interface; drop row padding.
    return out_row[0, :n].reshape(n, 1)


def init_params(key, in_dim):
    """Deterministic init mirroring torch.nn.Linear default U(-1/sqrt(fan_in), +)."""
    dims = [(in_dim, 64), (64, 16), (16, 1)]
    params = {}
    for idx, (fi, fo) in enumerate(dims, start=1):
        key, kw, kb = jax.random.split(key, 3)
        bound = 1.0 / jnp.sqrt(jnp.float32(fi))
        params[f"w{idx}"] = jax.random.uniform(
            kw, (fi, fo), jnp.float32, minval=-bound, maxval=bound)
        params[f"b{idx}"] = jax.random.uniform(
            kb, (1, fo), jnp.float32, minval=-bound, maxval=bound)
    return params


def reference_forward(z, params):
    """Pure f32 JAX reference of the PyTorch forward."""
    silu = lambda x: x * jax.nn.sigmoid(x)
    h1 = silu(z @ params["w1"] + params["b1"])
    h2 = silu(h1 @ params["w2"] + params["b2"])
    return h2 @ params["w3"] + params["b3"]


if __name__ == "__main__":
    # in_dim = 4 variables x (today + 6 lags) + 6 aggregate features = 34
    IN_DIM = 34

    key = jax.random.PRNGKey(0)
    kz, kp = jax.random.split(key)
    params = init_params(kp, IN_DIM)

    # (1) Multi-step grid: 512 rows split into two 256-row tiles.
    N = 512
    z = jax.random.normal(kz, (N, IN_DIM), jnp.float32)
    out = jax.block_until_ready(antecedent_net(z, params, block_n=256))
    ref = reference_forward(z, params)
    assert out.shape == (N, 1)
    assert jnp.allclose(out, ref, atol=1e-4, rtol=1e-4), "mismatch vs reference (N=512)"

    # (2) Small ragged batch: 200 rows -> one 256-row tile with 56 padded rows.
    N2 = 200
    z2 = jax.random.normal(jax.random.PRNGKey(1), (N2, IN_DIM), jnp.float32)
    out2 = jax.block_until_ready(antecedent_net(z2, params))
    ref2 = reference_forward(z2, params)
    assert out2.shape == (N2, 1)
    assert jnp.allclose(out2, ref2, atol=1e-4, rtol=1e-4), "mismatch vs reference (ragged)"

    # (3) Ragged batch that exercises the in-kernel lane-chunk loop
    #     (1900 rows -> 1920-row single tile, chunk = 640, 3 chunks).
    N3 = 1900
    z3 = jax.random.normal(jax.random.PRNGKey(2), (N3, IN_DIM), jnp.float32)
    out3 = jax.block_until_ready(antecedent_net(z3, params, block_n=2048))
    ref3 = reference_forward(z3, params)
    assert out3.shape == (N3, 1)
    assert jnp.allclose(out3, ref3, atol=1e-4, rtol=1e-4), "mismatch vs reference (chunked)"

    print("KERNEL_OK")
</pallas_src>

<mosaic_0001>
module attributes {stable_mosaic.version = 11 : i64} {
  func.func @antecedent_kernel(%arg0: i32, %arg1: memref<256x34xf32, #tpu.memory_space<vmem>>, %arg2: memref<64x34xf32, #tpu.memory_space<vmem>>, %arg3: memref<64x1xf32, #tpu.memory_space<vmem>>, %arg4: memref<16x64xf32, #tpu.memory_space<vmem>>, %arg5: memref<16x1xf32, #tpu.memory_space<vmem>>, %arg6: memref<16x1xf32, #tpu.memory_space<vmem>>, %arg7: memref<1x1xf32, #tpu.memory_space<vmem>>, %arg8: memref<1x256xf32, #tpu.memory_space<vmem>>) attributes {dimension_semantics = [#tpu.dimension_semantics<parallel>], iteration_bounds = array<i64: 2>, scalar_prefetch = 0 : i64, scratch_operands = 0 : i64, tpu.core_type = #tpu.core_type<tc>, window_params = [{transform_indices = @transform_0, window_bounds = array<i64: 256, 34>}, {pipeline_mode = #tpu.pipeline_mode<synchronous>, transform_indices = @transform_1, window_bounds = array<i64: 64, 34>}, {pipeline_mode = #tpu.pipeline_mode<synchronous>, transform_indices = @transform_2, window_bounds = array<i64: 64, 1>}, {pipeline_mode = #tpu.pipeline_mode<synchronous>, transform_indices = @transform_3, window_bounds = array<i64: 16, 64>}, {pipeline_mode = #tpu.pipeline_mode<synchronous>, transform_indices = @transform_4, window_bounds = array<i64: 16, 1>}, {pipeline_mode = #tpu.pipeline_mode<synchronous>, transform_indices = @transform_5, window_bounds = array<i64: 16, 1>}, {pipeline_mode = #tpu.pipeline_mode<synchronous>, transform_indices = @transform_6, window_bounds = array<i64: 1, 1>}, {transform_indices = @transform_7, window_bounds = array<i64: 1, 256>}]} {
    %c0 = arith.constant 0 : index
    %c0_0 = arith.constant 0 : index
    %0 = vector.load %arg2[%c0, %c0_0] : memref<64x34xf32, #tpu.memory_space<vmem>>, vector<64x34xf32>
    %c0_1 = arith.constant 0 : index
    %c0_2 = arith.constant 0 : index
    %1 = vector.load %arg3[%c0_1, %c0_2] : memref<64x1xf32, #tpu.memory_space<vmem>>, vector<64x1xf32>
    %c0_3 = arith.constant 0 : index
    %c0_4 = arith.constant 0 : index
    %2 = vector.load %arg4[%c0_3, %c0_4] : memref<16x64xf32, #tpu.memory_space<vmem>>, vector<16x64xf32>
    %c0_5 = arith.constant 0 : index
    %c0_6 = arith.constant 0 : index
    %3 = vector.load %arg5[%c0_5, %c0_6] : memref<16x1xf32, #tpu.memory_space<vmem>>, vector<16x1xf32>
    %c0_7 = arith.constant 0 : index
    %c0_8 = arith.constant 0 : index
    %4 = vector.load %arg6[%c0_7, %c0_8] : memref<16x1xf32, #tpu.memory_space<vmem>>, vector<16x1xf32>
    %c0_9 = arith.constant 0 : index
    %c0_10 = arith.constant 0 : index
    %5 = vector.load %arg7[%c0_9, %c0_10] : memref<1x1xf32, #tpu.memory_space<vmem>>, vector<1x1xf32>
    %c0_i32 = arith.constant 0 : i32
    %6 = tpu.assume_multiple %c0_i32, 128 : i32
    %7 = arith.index_cast %6 : i32 to index
    %c0_11 = arith.constant 0 : index
    %8 = vector.load %arg1[%7, %c0_11] : memref<256x34xf32, #tpu.memory_space<vmem>>, vector<256x34xf32>
    %cst = arith.constant dense<0.000000e+00> : vector<64x256xf32>
    %9 = tpu.matmul %0, %8, %cst {dimension_numbers = #tpu.dot_dimension_numbers<[1], [1], [0], [0], [0, 0, 1, 0], [], []>} : vector<64x34xf32>, vector<256x34xf32>, vector<64x256xf32> -> vector<64x256xf32>
    %10 = vector.broadcast %1 : vector<64x1xf32> to vector<64x256xf32>
    %11 = arith.addf %9, %10 : vector<64x256xf32>
    %cst_12 = arith.constant 5.000000e-01 : f32
    %12 = vector.broadcast %cst_12 : f32 to vector<64x256xf32>
    %13 = arith.mulf %12, %11 : vector<64x256xf32>
    %14 = math.tanh %13 : vector<64x256xf32>
    %cst_13 = arith.constant 5.000000e-01 : f32
    %15 = vector.broadcast %cst_13 : f32 to vector<64x256xf32>
    %16 = arith.mulf %15, %14 : vector<64x256xf32>
    %cst_14 = arith.constant 5.000000e-01 : f32
    %17 = vector.broadcast %cst_14 : f32 to vector<64x256xf32>
    %18 = arith.addf %16, %17 : vector<64x256xf32>
    %19 = arith.mulf %11, %18 : vector<64x256xf32>
    %cst_15 = arith.constant dense<0.000000e+00> : vector<16x256xf32>
    %20 = tpu.matmul %2, %19, %cst_15 {dimension_numbers = #tpu.dot_dimension_numbers<[1], [0], [0], [1], [0, 0, 1, 1], [], []>} : vector<16x64xf32>, vector<64x256xf32>, vector<16x256xf32> -> vector<16x256xf32>
    %21 = vector.broadcast %3 : vector<16x1xf32> to vector<16x256xf32>
    %22 = arith.addf %20, %21 : vector<16x256xf32>
    %cst_16 = arith.constant 5.000000e-01 : f32
    %23 = vector.broadcast %cst_16 : f32 to vector<16x256xf32>
    %24 = arith.mulf %23, %22 : vector<16x256xf32>
    %25 = math.tanh %24 : vector<16x256xf32>
    %cst_17 = arith.constant 5.000000e-01 : f32
    %26 = vector.broadcast %cst_17 : f32 to vector<16x256xf32>
    %27 = arith.mulf %26, %25 : vector<16x256xf32>
    %cst_18 = arith.constant 5.000000e-01 : f32
    %28 = vector.broadcast %cst_18 : f32 to vector<16x256xf32>
    %29 = arith.addf %27, %28 : vector<16x256xf32>
    %30 = arith.mulf %22, %29 : vector<16x256xf32>
    %31 = vector.broadcast %4 : vector<16x1xf32> to vector<16x256xf32>
    %32 = arith.mulf %30, %31 : vector<16x256xf32>
    %cst_19 = arith.constant dense<0.000000e+00> : vector<256xf32>
    %33 = vector.multi_reduction <add>, %32, %cst_19 [0] : vector<16x256xf32> to vector<256xf32>
    %34 = vector.shape_cast %33 : vector<256xf32> to vector<1x256xf32>
    %35 = vector.broadcast %5 : vector<1x1xf32> to vector<1x256xf32>
    %36 = arith.addf %34, %35 : vector<1x256xf32>
    %c0_20 = arith.constant 0 : index
    %37 = arith.index_cast %6 : i32 to index
    %38 = vector.load %arg8[%c0_20, %37] : memref<1x256xf32, #tpu.memory_space<vmem>>, vector<1x256xf32>
    tpu.vector_store %arg8[%c0_20, %37], %36 {strides = array<i32>} : memref<1x256xf32, #tpu.memory_space<vmem>>, vector<1x256xf32>,
    return
  }
  func.func @transform_0(%arg0: i32) -> (i32, i32) {
    %c0_i32 = arith.constant 0 : i32
    %c0_i32_0 = arith.constant 0 : i32
    return %arg0, %c0_i32 : i32, i32
  }
  func.func @transform_1(%arg0: i32) -> (i32, i32) {
    %c0_i32 = arith.constant 0 : i32
    %c0_i32_0 = arith.constant 0 : i32
    %c0_i32_1 = arith.constant 0 : i32
    return %c0_i32, %c0_i32_0 : i32, i32
  }
  func.func @transform_2(%arg0: i32) -> (i32, i32) {
    %c0_i32 = arith.constant 0 : i32
    %c0_i32_0 = arith.constant 0 : i32
    %c0_i32_1 = arith.constant 0 : i32
    return %c0_i32, %c0_i32_0 : i32, i32
  }
  func.func @transform_3(%arg0: i32) -> (i32, i32) {
    %c0_i32 = arith.constant 0 : i32
    %c0_i32_0 = arith.constant 0 : i32
    %c0_i32_1 = arith.constant 0 : i32
    return %c0_i32, %c0_i32_0 : i32, i32
  }
  func.func @transform_4(%arg0: i32) -> (i32, i32) {
    %c0_i32 = arith.constant 0 : i32
    %c0_i32_0 = arith.constant 0 : i32
    %c0_i32_1 = arith.constant 0 : i32
    return %c0_i32, %c0_i32_0 : i32, i32
  }
  func.func @transform_5(%arg0: i32) -> (i32, i32) {
    %c0_i32 = arith.constant 0 : i32
    %c0_i32_0 = arith.constant 0 : i32
    %c0_i32_1 = arith.constant 0 : i32
    return %c0_i32, %c0_i32_0 : i32, i32
  }
  func.func @transform_6(%arg0: i32) -> (i32, i32) {
    %c0_i32 = arith.constant 0 : i32
    %c0_i32_0 = arith.constant 0 : i32
    %c0_i32_1 = arith.constant 0 : i32
    return %c0_i32, %c0_i32_0 : i32, i32
  }
  func.func @transform_7(%arg0: i32) -> (i32, i32) {
    %c0_i32 = arith.constant 0 : i32
    %c0_i32_0 = arith.constant 0 : i32
    return %c0_i32, %arg0 : i32, i32
  }
}

</mosaic_0001>

<bundles_post_ra>
// kernel: antecedent_net.1
= control target key start
LH: loop header
LB: loop body
LE: loop exit
PB: predicated region body
PF: predicated region fallthrough
CT: control target
= control target key end

     0   :  { %s1537_s0 = inlined_call_operand.vmem [shape: f32[512,34], index: 0, kind: input, shape index: {}]   ;;  %s1538_s1 = inlined_call_operand.vmem [shape: f32[64,34], index: 1, kind: input, shape index: {}]   ;;  %s1539_s2 = inlined_call_operand.vmem [shape: f32[64,1], index: 2, kind: input, shape index: {}]   ;;  %s1540_s3 = inlined_call_operand.vmem [shape: f32[16,64], index: 3, kind: input, shape index: {}]   ;;  %s1541_s4 = inlined_call_operand.vmem [shape: f32[16,1], index: 4, kind: input, shape index: {}]   ;;  %s1542_s5 = inlined_call_operand.vmem [shape: f32[16,1], index: 5, kind: input, shape index: {}]   ;;  %s1543_s6 = inlined_call_operand.<no memory space> [shape: f32[1,1], index: 6, kind: input, shape index: {}]   ;;  %s1544_s7 = inlined_call_operand.hbm [shape: f32[1,512], index: 7, kind: output, shape index: {}]  }
   0x1   :  { %v12_v0 = vstv %s1543_s6 }
   0x2   :  { %13 = vst [vmem:[#allocation2] sm:$0x1] %v12_v0 }
   0x3   :  { %14 = vsyncpa [#allocation4], 0 }
   0x4   :  { %16 = vsyncpa [#allocation4 + $0x1], 0  ;;  %s1237_s26 = smov 0   ;;  %s1239_s27 = smov 0  }
   0x5   :  { %s1241_s28 = smov 0   ;;  %s1243_s29 = smov 0  }
   0x6 LB: > { %s940_s6 = sadd.s32 4294967295, %s1188_s29   ;;  %s941_s30 = sadd.s32 4294967294, %s1188_s29   ;;  %s1188_s29 = sphi %s1243_s29, %s1550_s29   ;;  %s1184_s28 = sphi %s1241_s28, %s1549_s28   ;;  %s1180_s27 = sphi %s1239_s27, %s1548_s27   ;;  %s1176_s26 = sphi %s1237_s26, %s1547_s26  }
   0x7   : > { %s1260_s8 = sadd.s32 1, %s1188_s29   ;;  %s181_s9 = sadd.s32 1, %s1184_s28 }
   0x8   : > { %s178_s10 = ssub.s32 %s1188_s29, %s1260_s8  ;;  %p191_p0 = scmp.ne.s32.totalorder %s1184_s28, %s1180_s27 }
   0x9   : > { %p179_p1 = scmp.eq.s32.totalorder %s178_s10, 0  ;;  %p192_p2 = scmp.eq.s32.totalorder %s940_s6, 1 }
   0xa   : > { %p197_p3 = scmp.ne.s32.totalorder %s1180_s27, %s1176_s26  ;;  %p198_p4 = scmp.eq.s32.totalorder %s941_s30, 1 }
   0xb   : > { %s1270_s11 = scalar_select %p179_p1, %s1184_s28, %s181_s9  }
   0xc   : > { %p1272_p5 = por %p192_p2, %p191_p0  ;;  %p1276_p6 = por %p198_p4, %p197_p3 }
   0xd   : > { %p944_p7 = scmp.ge.s32.totalorder %s1188_s29, 1  ;;  %p243_p8 = scmp.lt.s32.totalorder %s1188_s29, 3 }
   0xf   : > { %p244_p9 = pnand %p944_p7, %p243_p8 }
  0x10   : > { %s1282_s14 = sshll.u32 (!%p244_p9), %s940_s6, 5  ;;  %s272_s20 = sand.u32 (!%p244_p9), 1, %s1180_s27  }
  0x11   : > { %247 = sbr.rel (%p244_p9) target bundleno = 614 (0x266), region = 48  ;;  %p276_p10 = scmp.lt.s32.totalorder (!%p244_p9), %s1282_s14, 63 }
  0x12   : > { %s880_s25 = scalar_lea.hbm (!%p244_p9), %s1544_s7, %s1282_s14  ;;  %s868_s6 = scalar_lea.sflag (!%p244_p9), [#allocation4], %s272_s20 }
  0x13   : > { %s1193_s9 = smov (!%p244_p9), [#allocation3]  }
  0x14   : > { %s1132_s15 = sshll.u32 (!%p244_p9), %s1193_s9, 4  ;;  %s1133_s15 = int_to_ptr.vmem [resolvable:$false] %s1132_s15 }
  0x15   : > { %s1134_s16 = scalar_lea.vmem (!%p244_p9), %s1133_s15, 64 }
  0x16   : > { %vm377_vm0 = vcmask 277504   ;;  %v1287_v1 = vld [vmem:[%s1538_s1] sm:$0xff]  ;;  %v1190_v2 = vmov 0   ;;  %v295_v3 = vld [vmem:[%s1539_s2 + $0x28] sm:$0xff]  ;;  %s277_s19 = scalar_select %p276_p10, %s1282_s14, 63  ;;  %v297_v4 = vld [vmem:[%s1539_s2 + $0x38] sm:$0xff] }
  0x17   : > { %1028 = vmatprep.mubr.msk.f32.mxu0 %vm377_vm0, %v1287_v1  ;;  %1087 = vset.pattern.permute.xlu1 %v1190_v2  ;;  %v294_v5 = vld [vmem:[%s1539_s2 + $0x20] sm:$0xff]  ;;  %v296_v6 = vld [vmem:[%s1539_s2 + $0x30] sm:$0xff]  ;;  %v293_v11 = vld [vmem:[%s1539_s2 + $0x18] sm:$0xff]  ;;  %v1191_v55 = vmov 0.0   ;;  %vm701_vm1 = vcmask 523264  }
  0x18   : > { %1086 = vset.pattern.permute.xlu0 %v1190_v2  ;;  %364 = vperm.xlu1 %1087, %v295_v3   ;;  %s947_s24 = sshll.u32 %s277_s19, 3  ;;  %v292_v10 = vld [vmem:[%s1539_s2 + $0x10] sm:$0xff]  ;;  %v290_v14 = vld [vmem:[%s1539_s2] sm:$0xff]  ;;  %v291_v15 = vld [vmem:[%s1539_s2 + $0x8] sm:$0xff] }
  0x19   : > { %374 = vperm.xlu0 %1086, %v297_v4   ;;  %s1308_s10 = scalar_lea.vmem %s1537_s0, %s947_s24  ;;  %v301_v18 = vld [vmem:[%s1541_s4 + $0x8] sm:$0xff]  ;;  %v300_v19 = vld [vmem:[%s1541_s4] sm:$0xff]  ;;  %v284_v49 = vld [vmem:[%s1538_s1 + $0x10] sm:$0xff]  ;;  %772 = vmatprep.mubr.f32.mxu1 %v1191_v55 }
  0x1a   : > { %v336_v7 = vld [vmem:[%s1308_s10 + $0xf8] sm:$0xff]  ;;  %v335_v9 = vld [vmem:[%s1308_s10 + $0xf0] sm:$0xff]  ;;  %v334_v13 = vld [vmem:[%s1308_s10 + $0xe8] sm:$0xff] }
  0x1b   : > { %v320_v8 = vld [vmem:[%s1308_s10 + $0x78] sm:$0xff]  ;;  %996 = vmatprep.subr.msk.mxu0 %vm377_vm0, %v336_v7  ;;  %v319_v12 = vld [vmem:[%s1308_s10 + $0x70] sm:$0xff]  ;;  %v318_v16 = vld [vmem:[%s1308_s10 + $0x68] sm:$0xff] }
  0x1c   : > { %359 = vperm.xlu1 %1087, %v294_v5   ;;  %997 = vmatpush3.xpose.msk.msra.mxu0 %vm377_vm0, %v320_v8  ;;  %v333_v17 = vld [vmem:[%s1308_s10 + $0xe0] sm:$0xff]  ;;  %v332_v21 = vld [vmem:[%s1308_s10 + $0xd8] sm:$0xff]  ;;  %v303_v22 = vld [vmem:[%s1542_s5 + $0x8] sm:$0xff] }
  0x1d   : > { %369 = vperm.xlu0 %1086, %v296_v6   ;;  %998 = vmatprep.subr.msk.mxu0 %vm377_vm0, %v335_v9  ;;  %v317_v20 = vld [vmem:[%s1308_s10 + $0x60] sm:$0xff]  ;;  %v316_v24 = vld [vmem:[%s1308_s10 + $0x58] sm:$0xff]  ;;  %v331_v25 = vld [vmem:[%s1308_s10 + $0xd0] sm:$0xff] }
  0x1e   : > { %v302_v23 = vld [vmem:[%s1542_s5] sm:$0xff]  ;;  %v315_v27 = vld [vmem:[%s1308_s10 + $0x50] sm:$0xff]  ;;  %v330_v28 = vld [vmem:[%s1308_s10 + $0xc8] sm:$0xff] }
  0x1f   : > { %v304_v26 = vld [vmem:[#allocation2] sm:$0x1]  ;;  %v314_v29 = vld [vmem:[%s1308_s10 + $0x48] sm:$0xff]  ;;  %v328_v32 = vld [vmem:[%s1308_s10 + $0xb8] sm:$0xff] }
  0x20   : > { %349 = vperm.xlu1 %1087, %v292_v10   ;;  %999 = vmatpush3.xpose.msk.msra.mxu0 %vm377_vm0, %v319_v12  ;;  %v329_v30 = vld [vmem:[%s1308_s10 + $0xc0] sm:$0xff]  ;;  %v312_v33 = vld [vmem:[%s1308_s10 + $0x38] sm:$0xff]  ;;  %v327_v34 = vld [vmem:[%s1308_s10 + $0xb0] sm:$0xff] }
  0x21   : > { %354 = vperm.xlu0 %1086, %v293_v11   ;;  %1000 = vmatprep.subr.msk.mxu0 %vm377_vm0, %v334_v13  ;;  %v313_v31 = vld [vmem:[%s1308_s10 + $0x40] sm:$0xff]  ;;  %v311_v35 = vld [vmem:[%s1308_s10 + $0x30] sm:$0xff]  ;;  %v326_v36 = vld [vmem:[%s1308_s10 + $0xa8] sm:$0xff] }
  0x22   : > { %v310_v37 = vld [vmem:[%s1308_s10 + $0x28] sm:$0xff]  ;;  %v325_v38 = vld [vmem:[%s1308_s10 + $0xa0] sm:$0xff]  ;;  %v324_v40 = vld [vmem:[%s1308_s10 + $0x98] sm:$0xff] }
  0x23   : > { %v309_v39 = vld [vmem:[%s1308_s10 + $0x20] sm:$0xff]  ;;  %v308_v41 = vld [vmem:[%s1308_s10 + $0x18] sm:$0xff]  ;;  %v323_v42 = vld [vmem:[%s1308_s10 + $0x90] sm:$0xff] }
  0x24   : > { %339 = vperm.xlu1 %1087, %v290_v14   ;;  %1001 = vmatpush3.xpose.msk.msra.mxu0 %vm377_vm0, %v318_v16  ;;  %v307_v43 = vld [vmem:[%s1308_s10 + $0x10] sm:$0xff]  ;;  %v322_v44 = vld [vmem:[%s1308_s10 + $0x88] sm:$0xff]  ;;  %v321_v46 = vld [vmem:[%s1308_s10 + $0x80] sm:$0xff] }
  0x25   : > { %344 = vperm.xlu0 %1086, %v291_v15   ;;  %1002 = vmatprep.subr.msk.mxu0 %vm377_vm0, %v333_v17  ;;  %v306_v45 = vld [vmem:[%s1308_s10 + $0x8] sm:$0xff]  ;;  %v305_v47 = vld [vmem:[%s1308_s10] sm:$0xff]  ;;  %v285_v50 = vld [vmem:[%s1538_s1 + $0x18] sm:$0xff]  ;;  %s945_s10 = sshll.u32 %s272_s20, 1 }
  0x26   : > { %v283_v48 = vld [vmem:[%s1538_s1 + $0x8] sm:$0xff]  ;;  %v286_v51 = vld [vmem:[%s1538_s1 + $0x20] sm:$0xff]  ;;  %v288_v53 = vld [vmem:[%s1538_s1 + $0x30] sm:$0xff]  ;;  %s274_s21 = scalar_lea.vmem [#allocation3], %s945_s10 }
  0x27   : > { %v287_v52 = vld [vmem:[%s1538_s1 + $0x28] sm:$0xff]  ;;  %v289_v54 = vld [vmem:[%s1538_s1 + $0x38] sm:$0xff]  ;;  %s882_s22 = sshll.u32 %s274_s21, 4  ;;  %s883_s22 = int_to_ptr.vmem [resolvable:$true] %s882_s22 }
  0x28   : > { %698 = vperm.xlu1 %1087, %v301_v18   ;;  %1003 = vmatpush3.xpose.msk.msra.mxu0 %vm377_vm0, %v317_v20  ;;  %s1128_s30 = scalar_lea.vmem %s883_s22, 32  ;;  %p1135_p0 = scmp.lt.s32.totalorder %s883_s22, %s1133_s15 }
  0x29   : > { %693 = vperm.xlu0 %1086, %v300_v19   ;;  %1004 = vmatprep.subr.msk.mxu0 %vm377_vm0, %v332_v21  ;;  %p1129_p11 = scmp.ne.s32.totalorder %s883_s22, %s1128_s30  ;;  %p1136_p1 = scmp.lt.s32.totalorder %s1134_s16, %s1128_s30 }
  0x2b   : > { %p1130_p12 = pnand %p1129_p11, %p1272_p5  ;;  %p1137_p2 = por %p1136_p1, %p1135_p0 }
  0x2c   : > { %812 = vperm.xlu1 %1087, %v303_v22   ;;  %1005 = vmatpush3.xpose.msk.msra.mxu0 %vm377_vm0, %v316_v24 }
  0x2d   : > { %807 = vperm.xlu0 %1086, %v302_v23   ;;  %1006 = vmatprep.subr.msk.mxu0 %vm377_vm0, %v331_v25  ;;  %p1131_p13 = pneg %p1130_p12 }
  0x2f   : > { %p1138_p3 = pnand %p1137_p2, %p1131_p13 }
  0x30   : > { %1007 = vmatpush3.xpose.msk.msra.mxu0 %vm377_vm0, %v315_v27 }
  0x31   : > { %835 = vperm.xlu0 %1086, %v304_v26   ;;  %1008 = vmatprep.subr.msk.mxu0 %vm377_vm0, %v330_v28 }
  0x34   : > { %1009 = vmatpush3.xpose.msk.msra.mxu0 %vm377_vm0, %v314_v29 }
  0x35   : > { %1010 = vmatprep.subr.msk.mxu0 %vm377_vm0, %v329_v30 }
  0x38   : > { %1011 = vmatpush3.xpose.msk.msra.mxu0 %vm377_vm0, %v313_v31 }
  0x39   : > { %1012 = vmatprep.subr.msk.mxu0 %vm377_vm0, %v328_v32 }
  0x3c   : > { %1013 = vmatpush3.xpose.msk.msra.mxu0 %vm377_vm0, %v312_v33 }
  0x3d   : > { %1014 = vmatprep.subr.msk.mxu0 %vm377_vm0, %v327_v34 }
  0x40   : > { %1015 = vmatpush3.xpose.msk.msra.mxu0 %vm377_vm0, %v311_v35 }
  0x41   : > { %1016 = vmatprep.subr.msk.mxu0 %vm377_vm0, %v326_v36 }
  0x44   : > { %1017 = vmatpush3.xpose.msk.msra.mxu0 %vm377_vm0, %v310_v37 }
  0x45   : > { %1018 = vmatprep.subr.msk.mxu0 %vm377_vm0, %v325_v38 }
  0x48   : > { %1019 = vmatpush3.xpose.msk.msra.mxu0 %vm377_vm0, %v309_v39 }
  0x49   : > { %1020 = vmatprep.subr.msk.mxu0 %vm377_vm0, %v324_v40 }
  0x4c   : > { %1021 = vmatpush3.xpose.msk.msra.mxu0 %vm377_vm0, %v308_v41 }
  0x4d   : > { %1022 = vmatprep.subr.msk.mxu0 %vm377_vm0, %v323_v42 }
  0x50   : > { %1023 = vmatpush3.xpose.msk.msra.mxu0 %vm377_vm0, %v307_v43 }
  0x51   : > { %1024 = vmatprep.subr.msk.mxu0 %vm377_vm0, %v322_v44 }
  0x54   : > { %1025 = vmatpush3.xpose.msk.msra.mxu0 %vm377_vm0, %v306_v45 }
  0x55   : > { %1026 = vmatprep.subr.msk.mxu0 %vm377_vm0, %v321_v46 }
  0x58   : > { %1027 = vmatpush3.xpose.msk.msra.mxu0 %vm377_vm0, %v305_v47 }
  0x5b   : > { %1029 = vmatmul.mubr.msk.f32.vlgmr.msra.gmra.mxu0 %vm377_vm0, %v1287_v1 }
  0x5c   : > { %1030 = vmatprep.mubr.msk.f32.mxu0 %vm377_vm0, %v283_v48 }
  0x5f   : > { %1031 = vmatmul.mubr.msk.f32.gmra.mxu0 %vm377_vm0, %v283_v48 }
  0x60   : > { %1032 = vmatprep.mubr.msk.f32.mxu0 %vm377_vm0, %v284_v49 }
  0x63   : > { %1033 = vmatmul.mubr.msk.f32.gmra.mxu0 %vm377_vm0, %v284_v49 }
  0x64   : > { %1034 = vmatprep.mubr.msk.f32.mxu0 %vm377_vm0, %v285_v50 }
  0x67   : > { %1035 = vmatmul.mubr.msk.f32.gmra.mxu0 %vm377_vm0, %v285_v50 }
  0x68   : > { %1036 = vmatprep.mubr.msk.f32.mxu0 %vm377_vm0, %v286_v51 }
  0x6b   : > { %1037 = vmatmul.mubr.msk.f32.gmra.mxu0 %vm377_vm0, %v286_v51 }
  0x6c   : > { %1038 = vmatprep.mubr.msk.f32.mxu0 %vm377_vm0, %v287_v52 }
  0x6f   : > { %1039 = vmatmul.mubr.msk.f32.gmra.mxu0 %vm377_vm0, %v287_v52 }
  0x70   : > { %1040 = vmatprep.mubr.msk.f32.mxu0 %vm377_vm0, %v288_v53 }
  0x73   : > { %1041 = vmatmul.mubr.msk.f32.gmra.mxu0 %vm377_vm0, %v288_v53 }
  0x74   : > { %1042 = vmatprep.mubr.msk.f32.mxu0 %vm377_vm0, %v289_v54 }
  0x77   : > { %1043 = vmatmul.mubr.msk.f32.gmra.mxu0 %vm377_vm0, %v289_v54 }
  0x93   : > { %v365_v0 = vpop.permute.xlu1 %364 }
  0x94   : > { %v375_v63 = vpop.permute.xlu0 %374 }
  0x97   : > { %v360_v5 = vpop.permute.xlu1 %359 }
  0x98   : > { %v370_v4 = vpop.permute.xlu0 %369 }
  0x9b   : > { %v350_v17 = vpop.permute.xlu1 %349 }
  0x9c   : > { %v355_v11 = vpop.permute.xlu0 %354 }
  0x9f   : > { %v340_v34 = vpop.permute.xlu1 %339 }
  0xa0   : > { %v345_v28 = vpop.permute.xlu0 %344 }
 0x11b   : > { %v564_v56 = vpop.f32.mrf.mxu0 }
 0x11c   : > { %v1474_v42 = vadd.f32 %v564_v56, %v340_v34 }
 0x11d   : > { %v566_v57 = vpop.f32.mrf.mxu0 }
 0x11e   : > { %v1471_v40 = vadd.f32 %v566_v57, %v340_v34  ;;  %v611_v47 = vmul.f32 0.5, %v1474_v42 }
 0x11f   : > { %v570_v58 = vpop.f32.mrf.mxu0 }
 0x120   : > { %v1468_v38 = vadd.f32 %v570_v58, %v345_v28  ;;  %v612_v46 = vmul.f32 0.5, %v1471_v40 }
 0x121   : > { %v572_v59 = vpop.f32.mrf.mxu0 }
 0x122   : > { %v1465_v35 = vadd.f32 %v572_v59, %v345_v28  ;;  %v613_v45 = vmul.f32 0.5, %v1468_v38 }
 0x123   : > { %v576_v60 = vpop.f32.mrf.mxu0 }
 0x124   : > { %v1461_v31 = vadd.f32 %v576_v60, %v350_v17  ;;  %v614_v44 = vmul.f32 0.5, %v1465_v35 }
 0x125   : > { %v578_v61 = vpop.f32.mrf.mxu0 }
 0x126   : > { %v1459_v29 = vadd.f32 %v578_v61, %v350_v17  ;;  %v615_v43 = vmul.f32 0.5, %v1461_v31 }
 0x127   : > { %v582_v62 = vpop.f32.mrf.mxu0 }
 0x128   : > { %v1454_v24 = vadd.f32 %v582_v62, %v355_v11  ;;  %v616_v41 = vmul.f32 0.5, %v1459_v29 }
 0x129   : > { %v584_v1 = vpop.f32.mrf.mxu0 }
 0x12a   : > { %v1451_v22 = vadd.f32 %v584_v1, %v355_v11  ;;  %v617_v39 = vmul.f32 0.5, %v1454_v24 }
 0x12b   : > { %v588_v2 = vpop.f32.mrf.mxu0 }
 0x12c   : > { %v1447_v19 = vadd.f32 %v588_v2, %v360_v5  ;;  %v618_v36 = vmul.f32 0.5, %v1451_v22 }
 0x12d   : > { %v590_v3 = vpop.f32.mrf.mxu0 }
 0x12e   : > { %v1436_v7 = vadd.f32 %v590_v3, %v360_v5  ;;  %v619_v32 = vmul.f32 0.5, %v1447_v19 }
 0x12f   : > { %v594_v6 = vpop.f32.mrf.mxu0 }
 0x130   : > { %v1438_v8 = vadd.f32 %v594_v6, %v365_v0  ;;  %v620_v12 = vmul.f32 0.5, %v1436_v7 }
 0x131   : > { %v596_v9 = vpop.f32.mrf.mxu0 }
 0x132   : > { %v1441_v13 = vadd.f32 %v596_v9, %v365_v0  ;;  %v621_v15 = vmul.f32 0.5, %v1438_v8  ;;  %1088 = vtanh.f32 %v620_v12 }
 0x133   : > { %v600_v10 = vpop.f32.mrf.mxu0 }
 0x134   : > { %v1443_v14 = vadd.f32 %v600_v10, %v370_v4  ;;  %v622_v23 = vmul.f32 0.5, %v1441_v13  ;;  %1090 = vtanh.f32 %v621_v15 }
 0x135   : > { %v602_v16 = vpop.f32.mrf.mxu0 }
 0x136   : > { %v623_v18 = vmul.f32 0.5, %v1443_v14  ;;  %v1449_v20 = vadd.f32 %v602_v16, %v370_v4 }
 0x137   : > { %v606_v21 = vpop.f32.mrf.mxu0 }
 0x138   : > { %v624_v25 = vmul.f32 0.5, %v1449_v20  ;;  %v1457_v26 = vadd.f32 %v606_v21, %v375_v63  ;;  %1092 = vtanh.f32 %v623_v18 }
 0x139   : > { %v608_v27 = vpop.f32.mrf.mxu0 }
 0x13a   : > { %v609_v30 = vadd.f32 %v608_v27, %v375_v63  ;;  %1094 = vtanh.f32 %v624_v25  ;;  %v625_v33 = vmul.f32 0.5, %v1457_v26 }
 0x13b   : > { %1096 = vtanh.f32 %v622_v23 }
 0x13c   : > { %v626_v37 = vmul.f32 0.5, %v609_v30  ;;  %1098 = vtanh.f32 %v625_v33 }
 0x13e   : > { %1100 = vtanh.f32 %v626_v37 }
 0x13f   : > { %1102 = vtanh.f32 %v619_v32  ;;  %v1089_v48 = vpop.eup %1088 }
 0x140   : > { %1104 = vtanh.f32 %v618_v36  ;;  %v652_v2 = vmul.f32 0.5, %v1089_v48 }
 0x141   : > { %1106 = vtanh.f32 %v617_v39  ;;  %v1091_v49 = vpop.eup %1090 }
 0x142   : > { %1108 = vtanh.f32 %v616_v41  ;;  %v653_v63 = vmul.f32 0.5, %v1091_v49  ;;  %v668_v27 = vadd.f32 0.5, %v652_v2 }
 0x143   : > { %1110 = vtanh.f32 %v615_v43 }
 0x144   : > { %1112 = vtanh.f32 %v614_v44  ;;  %v669_v18 = vadd.f32 0.5, %v653_v63 }
 0x145   : > { %1114 = vtanh.f32 %v613_v45  ;;  %v1093_v50 = vpop.eup %1092 }
 0x146   : > { %1116 = vtanh.f32 %v612_v46  ;;  %v655_v57 = vmul.f32 0.5, %v1093_v50  ;;  %v685_v44 = vmul.f32 %v669_v18, %v1438_v8  ;;  %v684_v46 = vmul.f32 %v668_v27, %v1436_v7 }
 0x147   : > { %1118 = vtanh.f32 %v611_v47  ;;  %v1095_v51 = vpop.eup %1094 }
 0x148   : > { %v1097_v52 = vpop.eup %1096  ;;  %v656_v54 = vmul.f32 0.5, %v1095_v51  ;;  %v671_v9 = vadd.f32 0.5, %v655_v57 }
 0x149   : > { %v1099_v53 = vpop.eup %1098  ;;  %v654_v60 = vmul.f32 0.5, %v1097_v52 }
 0x14a   : > { %v657_v58 = vmul.f32 0.5, %v1099_v53  ;;  %v672_v3 = vadd.f32 0.5, %v656_v54  ;;  %v687_v36 = vmul.f32 %v671_v9, %v1443_v14 }
 0x14b   : > { %v1101_v56 = vpop.eup %1100  ;;  %v670_v12 = vadd.f32 0.5, %v654_v60 }
 0x14c   : > { %v1103_v59 = vpop.eup %1102  ;;  %v658_v61 = vmul.f32 0.5, %v1101_v56  ;;  %v673_v0 = vadd.f32 0.5, %v657_v58  ;;  %v688_v28 = vmul.f32 %v672_v3, %v1449_v20  ;;  %v699_v58 = vpop.permute.xlu1 %698 }
 0x14d   : > { %v1105_v62 = vpop.eup %1104  ;;  %v651_v6 = vmul.f32 0.5, %v1103_v59  ;;  %v686_v41 = vmul.f32 %v670_v12, %v1441_v13 }
 0x14e   : > { %v1107_v1 = vpop.eup %1106  ;;  %v674_v4 = vadd.f32 0.5, %v658_v61  ;;  %v650_v11 = vmul.f32 0.5, %v1105_v62  ;;  %v689_v21 = vmul.f32 %v673_v0, %v1457_v26 }
 0x14f   : > { %v1109_v5 = vpop.eup %1108  ;;  %v649_v17 = vmul.f32 0.5, %v1107_v1  ;;  %v667_v34 = vadd.f32 0.5, %v651_v6 }
 0x150   : > { %v1111_v10 = vpop.eup %1110  ;;  %v690_v15 = vmul.f32 %v674_v4, %v609_v30  ;;  %v648_v25 = vmul.f32 0.5, %v1109_v5  ;;  %v666_v30 = vadd.f32 0.5, %v650_v11 }
 0x151   : > { %v1113_v16 = vpop.eup %1112  ;;  %v647_v33 = vmul.f32 0.5, %v1111_v10  ;;  %v665_v26 = vadd.f32 0.5, %v649_v17  ;;  %v683_v14 = vmul.f32 %v667_v34, %v1447_v19 }
 0x152   : > { %v1115_v23 = vpop.eup %1114  ;;  %724 = vmatprep.subr.mxu1 %v690_v15  ;;  %v646_v39 = vmul.f32 0.5, %v1113_v16  ;;  %v664_v20 = vadd.f32 0.5, %v648_v25  ;;  %v682_v50 = vmul.f32 %v666_v30, %v1451_v22  ;;  %v813_v25 = vpop.permute.xlu1 %812 }
 0x153   : > { %v1117_v32 = vpop.eup %1116  ;;  %725 = vmatpush1.msra.mxu1 %v689_v21  ;;  %v645_v43 = vmul.f32 0.5, %v1115_v23  ;;  %v663_v48 = vadd.f32 0.5, %v647_v33  ;;  %v681_v51 = vmul.f32 %v665_v26, %v1454_v24 }
 0x154   : > { %v1119_v37 = vpop.eup %1118  ;;  %726 = vmatprep.subr.mxu1 %v688_v28  ;;  %v644_v45 = vmul.f32 0.5, %v1117_v32  ;;  %v662_v49 = vadd.f32 0.5, %v646_v39  ;;  %v680_v52 = vmul.f32 %v664_v20, %v1459_v29  ;;  %v298_v29 = vld [vmem:[%s1540_s3] sm:$0xff]  ;;  %v1192_v20 = vmov 1966171168  }
 0x155   : > { %727 = vmatpush1.msra.mxu1 %v687_v36  ;;  %v643_v47 = vmul.f32 0.5, %v1119_v37  ;;  %v661_v13 = vadd.f32 0.5, %v645_v43  ;;  %v679_v7 = vmul.f32 %v663_v48, %v1461_v31  ;;  %v299_v31 = vld [vmem:[%s1540_s3 + $0x8] sm:$0xff]  ;;  %v838_v37 = vlaneseq }
 0x156   : > { %728 = vmatprep.subr.mxu1 %v686_v41  ;;  %v660_v8 = vadd.f32 0.5, %v644_v45  ;;  %v678_v54 = vmul.f32 %v662_v49, %v1465_v35  ;;  %v694_v35 = vpop.permute.xlu0 %693 }
 0x157   : > { %729 = vmatpush1.msra.mxu1 %v685_v44  ;;  %v659_v53 = vadd.f32 0.5, %v643_v47  ;;  %v677_v19 = vmul.f32 %v661_v13, %v1468_v38  ;;  %v839_v26 = vshrl.u32 %v838_v37, 7  ;;  %vm864_vm2 = vcmp.lt.s32.totalorder %v838_v37, 256 }
 0x158   : > { %730 = vmatprep.subr.mxu1 %v684_v46  ;;  %v676_v22 = vmul.f32 %v660_v8, %v1471_v40  ;;  %v848_v46 = vunpack.c.l.s4 %v1192_v20 }
 0x159   : > { %731 = vmatpush1.msra.mxu1 %v683_v14  ;;  %v675_v24 = vmul.f32 %v659_v53, %v1474_v42  ;;  %v840_v14 = vsub.s32 0, %v839_v26 }
 0x15a   : > { %732 = vmatprep.subr.mxu1 %v682_v50  ;;  %v808_v23 = vpop.permute.xlu0 %807 }
 0x15b   : > { %733 = vmatpush1.msra.mxu1 %v681_v51  ;;  %v849_v51 = vunpack.c.0.s8 %v848_v46 }
 0x15c   : > { %734 = vmatprep.subr.mxu1 %v680_v52 }
 0x15d   : > { %735 = vmatpush1.msra.mxu1 %v679_v7 }
 0x15e   : > { %736 = vmatprep.subr.mxu1 %v678_v54  ;;  %v836_v13 = vpop.permute.xlu0 %835  ;;  %v852_v54 = vsub.s32 %v849_v51, %v839_v26 }
 0x15f   : > { %737 = vmatpush1.msra.mxu1 %v677_v19  ;;  %v841_v53 = vrot.slane %v836_v13, %v840_v14 }
 0x160   : > { %738 = vmatprep.subr.mxu1 %v676_v22 }
 0x161   : > { %739 = vmatpush1.msra.mxu1 %v675_v24 }
 0x162   : > { %988 = vmatmul.mubr.msk.f32.vlgmr.msra.gmra.mxu1 %vm701_vm1, %v298_v29 }
 0x163   : > { %778 = vmatprep.mubr.f32.mxu1 %v1191_v55 }
 0x166   : > { %989 = vmatmul.mubr.msk.f32.gmra.mxu1 %vm701_vm1, %v299_v31 }
 0x222   : > { %v774_v38 = vpop.f32.mrf.mxu1 }
 0x223   : > { %v775_v40 = vadd.f32 %v774_v38, %v694_v35 }
 0x224   : > { %v776_v42 = vpop.f32.mrf.mxu1 }
 0x225   : > { %v785_v56 = vmul.f32 0.5, %v775_v40  ;;  %v777_v57 = vadd.f32 %v776_v42, %v694_v35 }
 0x226   : > { %v780_v59 = vpop.f32.mrf.mxu1 }
 0x227   : > { %1120 = vtanh.f32 %v785_v56  ;;  %v786_v60 = vmul.f32 0.5, %v777_v57  ;;  %v781_v61 = vadd.f32 %v780_v59, %v699_v58 }
 0x228   : > { %v782_v62 = vpop.f32.mrf.mxu1 }
 0x229   : > { %1122 = vtanh.f32 %v786_v60  ;;  %v787_v63 = vmul.f32 0.5, %v781_v61  ;;  %v783_v55 = vadd.f32 %v782_v62, %v699_v58 }
 0x22b   : > { %1124 = vtanh.f32 %v787_v63  ;;  %v788_v0 = vmul.f32 0.5, %v783_v55 }
 0x22d   : > { %1126 = vtanh.f32 %v788_v0 }
 0x234   : > { %v1121_v1 = vpop.eup %1120 }
 0x235   : > { %v793_v2 = vmul.f32 0.5, %v1121_v1 }
 0x236   : > { %v1123_v3 = vpop.eup %1122 }
 0x237   : > { %v797_v4 = vadd.f32 0.5, %v793_v2  ;;  %v794_v5 = vmul.f32 0.5, %v1123_v3 }
 0x238   : > { %v1125_v6 = vpop.eup %1124 }
 0x239   : > { %v798_v9 = vadd.f32 0.5, %v794_v5  ;;  %v795_v10 = vmul.f32 0.5, %v1125_v6  ;;  %v801_v12 = vmul.f32 %v797_v4, %v775_v40 }
 0x23a   : > { %v1127_v11 = vpop.eup %1126 }
 0x23b   : > { %v799_v15 = vadd.f32 0.5, %v795_v10  ;;  %v796_v16 = vmul.f32 0.5, %v1127_v11  ;;  %v802_v17 = vmul.f32 %v798_v9, %v777_v57  ;;  %v815_v27 = vmul.f32 %v808_v23, %v801_v12 }
 0x23d   : > { %v803_v18 = vmul.f32 %v799_v15, %v781_v61  ;;  %v800_v21 = vadd.f32 0.5, %v796_v16  ;;  %v816_v33 = vmul.f32 %v808_v23, %v802_v17 }
 0x23f   : > { %v817_v28 = vmul.f32 %v813_v25, %v803_v18  ;;  %v804_v32 = vmul.f32 %v800_v21, %v783_v55 }
 0x241   : > { %v819_v34 = vadd.f32 %v817_v28, %v815_v27  ;;  %v818_v36 = vmul.f32 %v813_v25, %v804_v32 }
 0x243   : > { %v820_v39 = vrot.slane %v819_v34, 4  ;;  %v826_v30 = vadd.f32 %v818_v36, %v816_v33 }
 0x245   : > { %v821_v41 = vadd.f32 %v820_v39, %v819_v34  ;;  %v827_v43 = vrot.slane %v826_v30, 4 }
 0x247   : > { %v822_v44 = vrot.slane %v821_v41, 2  ;;  %v828_v45 = vadd.f32 %v827_v43, %v826_v30 }
 0x249   : > { %v823_v47 = vadd.f32 %v822_v44, %v821_v41  ;;  %v829_v48 = vrot.slane %v828_v45, 2 }
 0x24b   : > { %v824_v49 = vrot.slane %v823_v47, 1  ;;  %v830_v50 = vadd.f32 %v829_v48, %v828_v45 }
 0x24d   : > { %v825_v8 = vadd.f32 %v824_v49, %v823_v47  ;;  %v831_v52 = vrot.slane %v830_v50, 1 }
 0x24f   : > { %v832_v7 = vadd.f32 %v831_v52, %v830_v50  ;;  %v842_v19 = vadd.f32 %v841_v53, %v825_v8 }
 0x251   : > { %v843_v22 = vadd.f32 %v841_v53, %v832_v7 }
 0x253   : > { %v846_v24 = vcombine.low %v842_v19, %v843_v22 }
 0x255   : > { %v853_v29 = vrot.slane %v846_v24, %v852_v54 }
 0x257   : > { %v860_v31 = vrot.slane %v853_v29, %v852_v54 }
 0x259   : > { %866 = vst.msk [vmem:[%s274_s21] sm:$0x3] %vm864_vm2, %v860_v31 }
 0x25a   : > { %1141 = shalt.err (!%p1138_p3)
}
 0x25b   : > { %s1142_s17 = scalar_lea.hbm %s880_s25, 32  ;;  %s1146_s19 = scalar_lea.hbm %s1544_s7, 64 }
 0x25c   : > { %p1143_p4 = scmp.ne.s32.totalorder %s880_s25, %s1142_s17  ;;  %p1147_p9 = scmp.lt.s32.totalorder %s880_s25, %s1544_s7 }
 0x25d   : > { %p1148_p10 = scmp.lt.s32.totalorder %s1146_s19, %s1142_s17 }
 0x25e   : > { %p1144_p7 = pnand %p1143_p4, %p1272_p5 }
 0x25f   : > { %p1149_p11 = por %p1148_p10, %p1147_p9 }
 0x260   : > { %p1145_p8 = pneg %p1144_p7 }
 0x262   : > { %p1150_p12 = pnand %p1149_p11, %p1145_p8 }
 0x264   : > { %1153 = shalt.err (!%p1150_p12)
}
 0x265   : > { %1044 = dma.vmem_to_hbm [thread:$0]  (%p1272_p5), %s883_s22, 32, %s880_s25, %s868_s6  }
 0x266 PF: > { %p1050_p13 = scmp.ge.s32.totalorder %s1188_s29, 2  ;;  %s894_s21 = sand.u32 1, %s1176_s26  }
 0x267   : > { %s895_s23 = scalar_lea.sflag [#allocation4], %s894_s21 }
 0x268   : > { %p1047_p0 = pnand %p1050_p13, %p1276_p6 }
 0x26a   : > { %p1048_p1 = pneg %p1047_p0 }
 0x26c   : > { %1171 = dma.done.wait (%p1048_p1), %s895_s23, 32  }
 0x26d   : > { %1173 = vsyncadd (%p1048_p1), %s895_s23, 4294967264  ;;  %p19_p2 = scmp.ge.s32.totalorder %s1260_s8, 4   ;;  %s1547_s26 = smov %s1180_s27 }
 0x26e   : > { %s1548_s27 = smov %s1184_s28  ;;  %s1549_s28 = smov %s1270_s11 }
 0x26f   : > { %s1550_s29 = smov %s1260_s8  ;;  %21 = sbr.rel (!%p19_p2) target bundleno = 6 (0x6), region = 83 }
 0x274   :  { %900 = vsyncpa [#allocation4], 1 }
 0x275   :  { %902 = vsyncpa [#allocation4 + $0x1], 1 }

</bundles_post_ra>
